<compile_context>
chip_gen: v7x
topology: tpu7x:2x2x1
jax: 0.10.0
libtpu: 0.0.40
codegen_flags: <defaults>
</compile_context>

<pallas_src>
import functools
import math

import numpy as np
import jax
import jax.numpy as jnp
from jax.experimental import pallas as pl
from jax.experimental.pallas import tpu as pltpu


# ------------------------------------------------------------------------
# Static basis / index construction (numpy, mirrors torch __init__ exactly)
# ------------------------------------------------------------------------
def build_basis(kernel_size):
    k = kernel_size
    r = (k - 1) // 2
    xs = np.arange(-r, r + 1, dtype=np.float32)
    X = np.stack(np.meshgrid(xs, xs, indexing="ij"), -1)             # (k,k,2)
    R = np.sqrt(np.sum(X ** 2, -1))                                   # (k,k)
    rs, inds = np.unique(R, return_inverse=True)
    inds = inds.reshape(R.shape).astype(np.int32)
    indsxxxx = inds - 1
    indsxxxx[indsxxxx == -1] = 0
    indsidentity = inds

    identity = np.eye(2, dtype=np.float32)[:, :, None, None]          # (2,2,1,1)
    with np.errstate(divide="ignore", invalid="ignore"):
        Xhat = X / R[..., None]
    Xhat[R == 0] = 0.0
    Xhat = np.transpose(Xhat, (2, 0, 1))                              # (2,k,k)

    XXXX = Xhat[:, None, None, None] * Xhat[None, :, None, None] * Xhat[None, None, :, None] * Xhat[None, None, None, :]
    XXDD = Xhat[:, None, None, None] * Xhat[None, :, None, None] * identity[None, None, :, :]
    XDXD = Xhat[:, None, None, None] * identity[None, :, None, :] * Xhat[None, None, :, None]
    XDDX = Xhat[:, None, None, None] * identity[None, :, :, None] * Xhat[None, None, None, :]
    DXXD = identity[:, None, None, :] * Xhat[None, :, None, None] * Xhat[None, None, :, None]
    DXDX = identity[:, None, :, None] * Xhat[None, :, None, None] * Xhat[None, None, None, :]
    DDXX = identity[:, :, None, None] * Xhat[None, None, :, None] * Xhat[None, None, None, :]
    DDDD0 = identity[:, :, None, None] * identity[None, None, :, :]
    DDDD1 = identity[:, None, :, None] * identity[None, :, None, :]
    DDDD2 = identity[:, None, None, :] * identity[None, :, :, None]

    basis_xx = [t.reshape(4, 4, k, k) for t in (XXXX, XXDD, XDXD, XDDX, DXXD, DXDX, DDXX)]
    basis_dd = [t.reshape(4, 4, 1, 1) for t in (DDDD0, DDDD1, DDDD2)]
    return basis_xx, basis_dd, indsxxxx, indsidentity, len(rs)


def init_weights(key, out_channels, in_channels, num_radii):
    scale = 1.0 / np.sqrt(3 * in_channels * 2)
    keys = jax.random.split(key, 10)
    w_xx = [scale * jax.random.normal(keys[i], (out_channels, in_channels, num_radii - 1), jnp.float32)
            for i in range(7)]
    w_dd = [scale * jax.random.normal(keys[7 + i], (out_channels, in_channels, num_radii), jnp.float32)
            for i in range(3)]
    return w_xx, w_dd


def modulate(w, inds, basis):
    # Equivalent to torch:
    #   repeat_interleave(repeat_interleave(w, 4, 1), 4, 0)[..., inds] * basis_repeated
    oc, ic, _ = w.shape
    wfull = w[:, :, inds]                                              # (oc, ic, k, k)
    out = wfull[:, None, :, None, :, :] * jnp.asarray(basis)[None, :, None, :, :, :]
    return out.reshape(oc * 4, ic * 4, inds.shape[0], inds.shape[1])


def assemble_conv_weight(w_xx, w_dd, basis_xx, basis_dd, indsxxxx, indsidentity):
    c = jnp.zeros(())
    for w, b in zip(w_xx, basis_xx):
        c = c + modulate(w, indsxxxx, b)
    for w, b in zip(w_dd, basis_dd):
        c = c + modulate(w, indsidentity, b)
    return c                                                           # (4*oc, 4*ic, k, k)


# ------------------------------------------------------------------------
# Pallas conv2d kernel (stride 1, valid conv on a padded, flattened input)
# ------------------------------------------------------------------------
def _round_up(a, m):
    return ((a + m - 1) // m) * m


def _conv_kernel(x_ref, w_ref, o_ref, *, K, CIN, WROW, LOUT, use_im2col):
    # x_ref: (CIN, LIN)        flattened padded batch-group, row pitch WROW
    # w_ref: (COUT, K*K*CIN)   contraction ordered (kh, kw, cin)
    # o_ref: (COUT, LOUT)      LOUT = NB * HP * WROW
    x = x_ref[...]
    w = w_ref[...]
    if use_im2col:
        # im2col patch matrix built in VMEM from K*K statically-shifted slices
        taps = [x[:, kh * WROW + kw: kh * WROW + kw + LOUT]
                for kh in range(K) for kw in range(K)]                 # each (CIN, LOUT)
        patches = jnp.concatenate(taps, axis=0)                        # (K*K*CIN, LOUT)
        acc = jnp.dot(w, patches, preferred_element_type=jnp.float32)
    else:
        # large-CIN path: K*K accumulating matmuls, no patches buffer
        acc = jnp.zeros(o_ref.shape, jnp.float32)
        for kh in range(K):
            for kw in range(K):
                t = kh * K + kw
                acc = acc + jnp.dot(
                    w[:, t * CIN:(t + 1) * CIN],
                    x[:, kh * WROW + kw: kh * WROW + kw + LOUT],
                    preferred_element_type=jnp.float32)
    o_ref[...] = acc.astype(o_ref.dtype)


_PAD_MODE = {"zeros": "constant", "constant": "constant",
             "reflect": "reflect", "replicate": "edge", "circular": "wrap"}

_VMEM_BUDGET = 24 * (1 << 20)        # per-step resident budget; v7x (64 MiB VMEM) safe


def conv2d_pallas(x, c, padding, padding_mode="zeros", compute_dtype=None):
    """x: (N, Cin, H, W) NCHW; c: (Cout, Cin, K, K). Pads + convolves, returns NCHW."""
    N, CIN, H, W = x.shape
    COUT, CIN_w, K, _ = c.shape
    assert CIN_w == CIN
    HP, WP = H + 2 * padding, W + 2 * padding
    HO, WO = HP - K + 1, WP - K + 1
    assert HO >= 1 and WO >= 1

    cdt = jnp.dtype(compute_dtype) if compute_dtype is not None else x.dtype
    isz = jnp.dtype(cdt).itemsize
    osz = x.dtype.itemsize

    # Row pitch; no %128 forcing — one masked tail store is cheaper than 33-50%
    # inflated lanes (review item).  Alignment columns never feed kept outputs.
    WROW = _round_up(WP, 8)
    HSEG = HP                           # per-image segment height in the tall image
    KKC = K * K * CIN
    GROWS = K                           # zero guard rows so every tap slice is in bounds
    use_im2col = CIN < 128              # switch to K*K accumulating dots for large CIN

    def footprint(nb):                  # approximate per-step VMEM bytes (double-buffered I/O)
        lin = (nb * HSEG + GROWS) * WROW
        lout = nb * HSEG * WROW
        f = 2 * CIN * lin * isz + 2 * COUT * KKC * isz + 2 * COUT * lout * osz
        f += (4 * KKC * lout) if use_im2col else (4 * CIN * lout)
        return f

    # Fold as many images per grid step as the VMEM budget allows (NB divides N).
    NB = 1
    for d in range(N, 0, -1):
        if N % d == 0 and footprint(d) <= _VMEM_BUDGET:
            NB = d
            break
    G = N // NB
    LIN = (NB * HSEG + GROWS) * WROW
    LOUT = NB * HSEG * WROW

    # Stack each group's NB images along H (channel-major), semantic pad per image,
    # width-align to WROW, flatten, append guard rows.
    xg = jnp.transpose(x.reshape(G, NB, CIN, H, W), (0, 2, 1, 3, 4))   # (G,CIN,NB,H,W)
    mode = _PAD_MODE[padding_mode]
    if mode == "constant":
        xp = jnp.pad(xg, ((0, 0), (0, 0), (0, 0),
                          (padding, padding),
                          (padding, padding + (WROW - WP))))
    else:
        xp = jnp.pad(xg, ((0, 0), (0, 0), (0, 0),
                          (padding, padding), (padding, padding)), mode=mode)
        xp = jnp.pad(xp, ((0, 0), (0, 0), (0, 0), (0, 0), (0, WROW - WP)))
    x_flat = xp.reshape(G, CIN, NB * HSEG * WROW)                      # free trailing reshape
    x_flat = jnp.pad(x_flat, ((0, 0), (0, 0), (0, GROWS * WROW)))      # bottom guard rows

    # Single dense weight tile (COUT, K*K*CIN); contraction order (kh, kw, cin).
    w_flat = jnp.transpose(c, (0, 2, 3, 1)).reshape(COUT, KKC)
    if compute_dtype is not None:
        x_flat = x_flat.astype(cdt)
        w_flat = w_flat.astype(cdt)

    kern = functools.partial(_conv_kernel, K=K, CIN=CIN, WROW=WROW,
                             LOUT=LOUT, use_im2col=use_im2col)

    flops = 2 * G * COUT * KKC * LOUT
    bytes_accessed = (G * CIN * LIN + COUT * KKC) * isz + G * COUT * LOUT * osz
    vmem_limit = int(min(64 * (1 << 20), max(32 * (1 << 20), 2 * footprint(NB))))

    out_flat = pl.pallas_call(
        kern,
        out_shape=jax.ShapeDtypeStruct((G, COUT, LOUT), x.dtype),
        grid_spec=pltpu.PrefetchScalarGridSpec(
            num_scalar_prefetch=0,
            grid=(G,),                                   # G == 1 for small N (no per-image steps)
            in_specs=[
                pl.BlockSpec((None, CIN, LIN), lambda g: (g, 0, 0)),
                pl.BlockSpec((COUT, KKC), lambda g: (0, 0)),     # VMEM-resident weight
            ],
            out_specs=pl.BlockSpec((None, COUT, LOUT), lambda g: (g, 0, 0)),
        ),
        compiler_params=pltpu.CompilerParams(
            dimension_semantics=("parallel",),
            vmem_limit_bytes=vmem_limit),
        cost_estimate=pl.CostEstimate(flops=flops, transcendentals=0,
                                      bytes_accessed=bytes_accessed),
    )(x_flat, w_flat)

    # (G, COUT, NB*HSEG*WROW) -> per-image NCHW; trailing reshape is free, the
    # transpose+slice fuse into one small copy that restores module semantics.
    out = out_flat.reshape(G, COUT, NB, HSEG, WROW)
    out = jnp.transpose(out, (0, 2, 1, 3, 4)).reshape(N, COUT, HSEG, WROW)
    return out[:, :, :HO, :WO]


# ------------------------------------------------------------------------
# Full forward pass (equivalent to MatrixToMatrix.forward)
# ------------------------------------------------------------------------
def matrix_to_matrix_forward(x, w_xx, w_dd, basis_xx, basis_dd,
                             indsxxxx, indsidentity, padding, padding_mode="zeros",
                             compute_dtype=None):
    c = assemble_conv_weight(w_xx, w_dd, basis_xx, basis_dd, indsxxxx, indsidentity)
    return conv2d_pallas(x, c, padding, padding_mode, compute_dtype)


# ------------------------------------------------------------------------
if __name__ == "__main__":
    in_channels = 2
    out_channels = 2
    kernel_size = 3
    padding = 1
    batch, spatial = 2, 16

    basis_xx, basis_dd, indsxxxx, indsidentity, num_radii = build_basis(kernel_size)

    key = jax.random.PRNGKey(0)
    k_w, k_x = jax.random.split(key)
    w_xx, w_dd = init_weights(k_w, out_channels, in_channels, num_radii)

    # forward input has 4*in_channels channels (vector-of-matrix field)
    x = jax.random.normal(k_x, (batch, 4 * in_channels, spatial, spatial), jnp.float32)

    out = matrix_to_matrix_forward(x, w_xx, w_dd, basis_xx, basis_dd,
                                   indsxxxx, indsidentity, padding, "zeros")
    out = jax.block_until_ready(out)

    # sanity check against XLA's conv on the same assembled weight
    c = assemble_conv_weight(w_xx, w_dd, basis_xx, basis_dd, indsxxxx, indsidentity)
    x_pad = jnp.pad(x, ((0, 0), (0, 0), (padding, padding), (padding, padding)))
    ref = jax.lax.conv_general_dilated(x_pad, c, (1, 1), "VALID",
                                       dimension_numbers=("NCHW", "OIHW", "NCHW"))
    ref = jax.block_until_ready(ref)

    assert out.shape == (batch, 4 * out_channels, spatial, spatial), out.shape
    assert np.allclose(np.asarray(out), np.asarray(ref), atol=2e-4, rtol=1e-4)
    print("KERNEL_OK")
</pallas_src>

<mosaic_0001>
module attributes {stable_mosaic.version = 11 : i64} {
  func.func @_conv_kernel(%arg0: i32, %arg1: memref<1x8x936xf32, #tpu.memory_space<vmem>>, %arg2: memref<8x72xf32, #tpu.memory_space<vmem>>, %arg3: memref<1x8x864xf32, #tpu.memory_space<vmem>>) attributes {dimension_semantics = [#tpu.dimension_semantics<parallel>], iteration_bounds = array<i64: 1>, scalar_prefetch = 0 : i64, scratch_operands = 0 : i64, tpu.core_type = #tpu.core_type<tc>, window_params = [{transform_indices = @transform_0, window_bounds = array<i64: 1, 8, 936>}, {pipeline_mode = #tpu.pipeline_mode<synchronous>, transform_indices = @transform_1, window_bounds = array<i64: 8, 72>}, {transform_indices = @transform_2, window_bounds = array<i64: 1, 8, 864>}]} {
    %c0 = arith.constant 0 : index
    %c0_0 = arith.constant 0 : index
    %c0_1 = arith.constant 0 : index
    %0 = vector.load %arg1[%c0, %c0_0, %c0_1] : memref<1x8x936xf32, #tpu.memory_space<vmem>>, vector<1x8x936xf32>
    %1 = vector.shape_cast %0 : vector<1x8x936xf32> to vector<8x936xf32>
    %c0_2 = arith.constant 0 : index
    %c0_3 = arith.constant 0 : index
    %2 = vector.load %arg2[%c0_2, %c0_3] : memref<8x72xf32, #tpu.memory_space<vmem>>, vector<8x72xf32>
    %3 = vector.extract_strided_slice %1 {offsets = [0, 0], sizes = [8, 864], strides = [1, 1]} : vector<8x936xf32> to vector<8x864xf32>
    %4 = vector.extract_strided_slice %1 {offsets = [0, 1], sizes = [8, 864], strides = [1, 1]} : vector<8x936xf32> to vector<8x864xf32>
    %5 = vector.extract_strided_slice %1 {offsets = [0, 2], sizes = [8, 864], strides = [1, 1]} : vector<8x936xf32> to vector<8x864xf32>
    %6 = vector.extract_strided_slice %1 {offsets = [0, 24], sizes = [8, 864], strides = [1, 1]} : vector<8x936xf32> to vector<8x864xf32>
    %7 = vector.extract_strided_slice %1 {offsets = [0, 25], sizes = [8, 864], strides = [1, 1]} : vector<8x936xf32> to vector<8x864xf32>
    %8 = vector.extract_strided_slice %1 {offsets = [0, 26], sizes = [8, 864], strides = [1, 1]} : vector<8x936xf32> to vector<8x864xf32>
    %9 = vector.extract_strided_slice %1 {offsets = [0, 48], sizes = [8, 864], strides = [1, 1]} : vector<8x936xf32> to vector<8x864xf32>
    %10 = vector.extract_strided_slice %1 {offsets = [0, 49], sizes = [8, 864], strides = [1, 1]} : vector<8x936xf32> to vector<8x864xf32>
    %11 = vector.extract_strided_slice %1 {offsets = [0, 50], sizes = [8, 864], strides = [1, 1]} : vector<8x936xf32> to vector<8x864xf32>
    %12 = tpu.concatenate %3, %4, %5, %6, %7, %8, %9, %10, %11 in 0 : vector<8x864xf32>, vector<8x864xf32>, vector<8x864xf32>, vector<8x864xf32>, vector<8x864xf32>, vector<8x864xf32>, vector<8x864xf32>, vector<8x864xf32>, vector<8x864xf32> -> vector<72x864xf32>
    %cst = arith.constant dense<0.000000e+00> : vector<8x864xf32>
    %13 = tpu.matmul %2, %12, %cst {dimension_numbers = #tpu.dot_dimension_numbers<[1], [0], [0], [1], [0, 0, 1, 1], [], []>} : vector<8x72xf32>, vector<72x864xf32>, vector<8x864xf32> -> vector<8x864xf32>
    %c0_4 = arith.constant 0 : index
    %c0_5 = arith.constant 0 : index
    %c0_6 = arith.constant 0 : index
    %14 = vector.load %arg3[%c0_4, %c0_5, %c0_6] : memref<1x8x864xf32, #tpu.memory_space<vmem>>, vector<1x8x864xf32>
    %15 = vector.shape_cast %14 : vector<1x8x864xf32> to vector<8x864xf32>
    %16 = vector.shape_cast %13 : vector<8x864xf32> to vector<1x8x864xf32>
    tpu.vector_store %arg3[%c0_4, %c0_5, %c0_6], %16 {strides = array<i32>} : memref<1x8x864xf32, #tpu.memory_space<vmem>>, vector<1x8x864xf32>,
    return
  }
  func.func @transform_0(%arg0: i32) -> (i32, i32, i32) {
    %c0_i32 = arith.constant 0 : i32
    %c0_i32_0 = arith.constant 0 : i32
    %c0_i32_1 = arith.constant 0 : i32
    return %arg0, %c0_i32, %c0_i32_0 : i32, i32, i32
  }
  func.func @transform_1(%arg0: i32) -> (i32, i32) {
    %c0_i32 = arith.constant 0 : i32
    %c0_i32_0 = arith.constant 0 : i32
    %c0_i32_1 = arith.constant 0 : i32
    return %c0_i32, %c0_i32_0 : i32, i32
  }
  func.func @transform_2(%arg0: i32) -> (i32, i32, i32) {
    %c0_i32 = arith.constant 0 : i32
    %c0_i32_0 = arith.constant 0 : i32
    %c0_i32_1 = arith.constant 0 : i32
    return %arg0, %c0_i32, %c0_i32_0 : i32, i32, i32
  }
}

</mosaic_0001>

<bundles_post_ra>
// kernel: tpu_custom_call.1
= control target key start
LH: loop header
LB: loop body
LE: loop exit
PB: predicated region body
PF: predicated region fallthrough
CT: control target
= control target key end

     0   :  { %7 = vsyncpa [#allocation3], 0  ;;  %s1113_s0 = inlined_call_operand.hbm [shape: f32[1,8,936], index: 0, kind: input, shape index: {}]   ;;  %s1114_s1 = inlined_call_operand.hbm [shape: f32[8,72], index: 1, kind: input, shape index: {}]   ;;  %s1115_s2 = inlined_call_operand.hbm [shape: f32[1,8,864], index: 2, kind: output, shape index: {}]  }
   0x1   :  { %8 = vsyncpa [#allocation6], 0 }
   0x2   :  { %9 = vsyncpa [#allocation4], 0  ;;  %s883_s9 = smov [#allocation2]   ;;  %s884_s11 = smov [#allocation5]  }
   0x3   :  { %s16_s10 = sshll.u32 %s883_s9, 4  ;;  %s26_s12 = sshll.u32 %s884_s11, 4  ;;  %s17_s10 = int_to_ptr.vmem [resolvable:$true] %s16_s10  ;;  %s27_s12 = int_to_ptr.vmem [resolvable:$true] %s26_s12 }
   0x4   :  { %s811_s15 = scalar_lea.hbm %s1113_s0, 1024 }
   0x5   :  { %p812_p0 = scmp.ne.s32.totalorder %s1113_s0, %s811_s15  ;;  %p815_p1 = scmp.lt.u32.totalorder %s811_s15, %s1113_s0 }
   0x7   :  { %p817_p2 = pnand %p815_p1, %p812_p0 }
   0x9   :  { %820 = shalt.err (!%p817_p2)
}
   0xa   :  { %s821_s20 = scalar_lea.vmem %s17_s10, 1024  ;;  %p826_p4 = scmp.lt.s32.totalorder %s17_s10, %s17_s10 }
   0xb   :  { %p822_p3 = scmp.ne.s32.totalorder %s17_s10, %s821_s20  ;;  %p827_p5 = scmp.lt.s32.totalorder %s821_s20, %s821_s20 }
   0xd   :  { %p828_p6 = por %p827_p5, %p826_p4 }
   0xf   :  { %p829_p7 = pnand %p828_p6, %p822_p3 }
  0x11   :  { %832 = shalt.err (!%p829_p7)
}
  0x12   :  { %19 = dma.hbm_to_vmem [thread:$0]  %s1113_s0, 1024, %s17_s10, [#allocation3]  }
  0x13   :  { %s833_s25 = scalar_lea.hbm %s1114_s1, 128 }
  0x14   :  { %p834_p8 = scmp.ne.s32.totalorder %s1114_s1, %s833_s25  ;;  %p837_p9 = scmp.lt.u32.totalorder %s833_s25, %s1114_s1 }
  0x16   :  { %p839_p10 = pnand %p837_p9, %p834_p8 }
  0x18   :  { %842 = shalt.err (!%p839_p10)
}
  0x19   :  { %s843_s30 = scalar_lea.vmem %s27_s12, 128  ;;  %p848_p12 = scmp.lt.s32.totalorder %s27_s12, %s27_s12 }
  0x1a   :  { %p844_p11 = scmp.ne.s32.totalorder %s27_s12, %s843_s30  ;;  %p849_p13 = scmp.lt.s32.totalorder %s843_s30, %s843_s30 }
  0x1c   :  { %p850_p0 = por %p849_p13, %p848_p12 }
  0x1e   :  { %p851_p1 = pnand %p850_p0, %p844_p11 }
  0x20   :  { %854 = shalt.err (!%p851_p1)
}
  0x21   :  { %29 = dma.hbm_to_vmem [thread:$0]  %s1114_s1, 128, %s27_s12, [#allocation6]  }
  0x22   :  { %877 = dma.done.wait [#allocation3], 1024  }
  0x23   :  { %878 = vsyncadd [#allocation3], 4294966272 }
  0x24   :  { %879 = dma.done.wait [#allocation6], 128  }
  0x25   :  { %880 = vsyncadd [#allocation6], 4294967168  ;;  %v936_v0 = vld [vmem:[#allocation2 + $0x20] sm:$0xff]  ;;  %v938_v1 = vld [vmem:[#allocation2 + $0x28] sm:$0xff]  ;;  %s885_s1 = smov 127   ;;  %s886_s4 = smov 126  }
  0x26   :  { %v940_v2 = vld [vmem:[#allocation2 + $0x8] sm:$0xff]  ;;  %v716_v3 = vpack.i.bf16 %v938_v1, %v936_v0  ;;  %v944_v4 = vld [vmem:[#allocation2 + $0x10] sm:$0xff]  ;;  %v946_v5 = vld [vmem:[#allocation2] sm:$0xff]  ;;  %s887_s5 = smov 104   ;;  %s888_s6 = smov 103   ;;  %v892_v10 = vmov 0.0  }
  0x27   :  { %v948_v6 = vld [vmem:[#allocation2 + $0x18] sm:$0xff]  ;;  %v706_v7 = vpack.i.bf16 %v944_v4, %v940_v2  ;;  %s889_s7 = smov 102   ;;  %s890_s8 = smov 80   ;;  %v970_v9 = vld [vmem:[#allocation2 + $0x30] sm:$0xff]  ;;  %354 = vmatprep.mubr.f32.mxu0 %v892_v10  ;;  %425 = vmatprep.mubr.f32.mxu1 %v892_v10  ;;  %vm66_vm0 = vcmask 1039360   ;;  %vm94_vm1 = vcmask 1031168  }
  0x28   :  { %717 = vrot.lane.b32.xlu1 %v716_v3, %s885_s1  ;;  %v711_v8 = vpack.i.bf16 %v948_v6, %v946_v5  ;;  %s891_s9 = smov 79   ;;  %s893_s10 = smov 78   ;;  %v791_v11 = vpack.i.bf16 %v970_v9, %v938_v1  ;;  %v43_v12 = vld [vmem:[#allocation2 + $0x38] sm:$0xff]  ;;  %vm122_vm2 = vcmask 850944   ;;  %vm150_vm3 = vcmask 842752  }
  0x29   :  { %707 = vrot.lane.b32.xlu0 %v706_v7, %s885_s1  ;;  %vm178_vm4 = vcmask 834560   ;;  %vm209_vm5 = vcmask 654336   ;;  %vm240_vm6 = vcmask 646144   ;;  %vm271_vm7 = vcmask 637952   ;;  %s896_s11 = smov [#allocation7]  }
  0x2a   :  { %vm286_vm8 = vcmask 588800   ;;  %vm895_vm9 = vmmov 0   ;;  %s587_s12 = sshll.u32 %s896_s11, 4  ;;  %vm579_vm10 = vcmask 785408   ;;  %s588_s12 = int_to_ptr.vmem [resolvable:$true] %s587_s12 }
  0x2b   :  { %s855_s13 = scalar_lea.vmem %s588_s12, 896  ;;  %p860_p3 = scmp.lt.s32.totalorder %s588_s12, %s588_s12 }
  0x2c   :  { %722 = vrot.lane.b32.xlu1 %v706_v7, %s886_s4  ;;  %p856_p2 = scmp.ne.s32.totalorder %s588_s12, %s855_s13  ;;  %p861_p4 = scmp.lt.s32.totalorder %s855_s13, %s855_s13 }
  0x2d   :  { %712 = vrot.lane.b32.xlu0 %v711_v8, %s885_s1 }
  0x2e   :  { %p862_p5 = por %p861_p4, %p860_p3 }
  0x30   :  { %732 = vrot.lane.b32.xlu1 %v711_v8, %s886_s4  ;;  %p863_p6 = pnand %p862_p5, %p856_p2 }
  0x31   :  { %727 = vrot.lane.b32.xlu0 %v706_v7, %s887_s5 }
  0x34   :  { %742 = vrot.lane.b32.xlu1 %v711_v8, %s887_s5 }
  0x35   :  { %737 = vrot.lane.b32.xlu0 %v716_v3, %s886_s4 }
  0x38   :  { %747 = vrot.lane.b32.xlu1 %v706_v7, %s888_s6 }
  0x39   :  { %116 = vrot.lane.b32.xlu0 %v936_v0, %s887_s5 }
  0x3c   :  { %757 = vrot.lane.b32.xlu1 %v711_v8, %s888_s6 }
  0x3d   :  { %752 = vrot.lane.b32.xlu0 %v706_v7, %s889_s7 }
  0x40   :  { %762 = vrot.lane.b32.xlu1 %v711_v8, %s889_s7 }
  0x41   :  { %144 = vrot.lane.b32.xlu0 %v936_v0, %s888_s6 }
  0x44   :  { %767 = vrot.lane.b32.xlu1 %v706_v7, %s890_s8 }
  0x45   :  { %172 = vrot.lane.b32.xlu0 %v936_v0, %s889_s7 }
  0x48   :  { %777 = vrot.lane.b32.xlu1 %v711_v8, %s890_s8 }
  0x49   :  { %772 = vrot.lane.b32.xlu0 %v706_v7, %s891_s9 }
  0x4c   :  { %782 = vrot.lane.b32.xlu1 %v711_v8, %s891_s9 }
  0x4d   :  { %201 = vrot.lane.b32.xlu0 %v936_v0, %s890_s8 }
  0x50   :  { %64 = vrot.lane.b32.xlu1 %v970_v9, %s885_s1 }
  0x51   :  { %232 = vrot.lane.b32.xlu0 %v936_v0, %s891_s9 }
  0x54   :  { %259 = vrot.lane.b32.xlu1 %v944_v4, %s893_s10 }
  0x55   :  { %257 = vrot.lane.b32.xlu0 %v940_v2, %s893_s10 }
  0x58   :  { %261 = vrot.lane.b32.xlu1 %v948_v6, %s893_s10 }
  0x59   :  { %255 = vrot.lane.b32.xlu0 %v946_v5, %s893_s10 }
  0x5c   :  { %92 = vrot.lane.b32.xlu1 %v970_v9, %s886_s4 }
  0x5d   :  { %263 = vrot.lane.b32.xlu0 %v936_v0, %s893_s10 }
  0x60   :  { %792 = vrot.lane.b32.xlu1 %v791_v11, %s888_s6 }
  0x61   :  { %787 = vrot.lane.b32.xlu0 %v791_v11, %s887_s5 }
  0x64   :  { %802 = vrot.lane.b32.xlu1 %v791_v11, %s890_s8 }
  0x65   :  { %797 = vrot.lane.b32.xlu0 %v791_v11, %s889_s7 }
  0x68   :  { %207 = vrot.lane.b32.xlu1 %v43_v12, %s890_s8 }
  0x69   :  { %807 = vrot.lane.b32.xlu0 %v791_v11, %s891_s9 }
  0x6c   :  { %265 = vrot.lane.b32.xlu1 %v938_v1, %s893_s10 }
  0x6d   :  { %238 = vrot.lane.b32.xlu0 %v43_v12, %s891_s9 }
  0x70   :  { %269 = vrot.lane.b32.xlu1 %v43_v12, %s893_s10 }
  0x71   :  { %267 = vrot.lane.b32.xlu0 %v970_v9, %s893_s10 }
  0x9a   :  { %v990_v13 = vpop.permute.xlu1 %717 }
  0x9b   :  { %v708_v14 = vpop.permute.xlu0 %707  ;;  %v719_v21 = vunpack.i.l.bf16 %v990_v13 }
  0x9c   :  { %v710_v15 = vunpack.i.h.bf16 %v708_v14  ;;  %v709_v16 = vunpack.i.l.bf16 %v708_v14 }
  0x9e   :  { %v723_v17 = vpop.permute.xlu1 %722  ;;  %v68_v18 = vsel %vm66_vm0, %v709_v16, %v710_v15 }
  0x9f   :  { %v713_v19 = vpop.permute.xlu0 %712  ;;  %v632_v20 = vpack.c.bf16 %v68_v18, %v940_v2  ;;  %v725_v24 = vunpack.i.h.bf16 %v723_v17  ;;  %v724_v25 = vunpack.i.l.bf16 %v723_v17 }
  0xa0   :  { %v715_v22 = vunpack.i.h.bf16 %v713_v19  ;;  %v714_v23 = vunpack.i.l.bf16 %v713_v19 }
  0xa1   :  { %633 = vmatprep.subr.bf16.mxu0 %v632_v20  ;;  %v96_v38 = vsel %vm94_vm1, %v724_v25, %v725_v24 }
  0xa2   :  { %v733_v26 = vpop.permute.xlu1 %732  ;;  %v67_v27 = vsel %vm66_vm0, %v714_v23, %v709_v16  ;;  %v70_v28 = vsel %vm66_vm0, %v715_v22, %v719_v21  ;;  %v69_v29 = vsel %vm66_vm0, %v710_v15, %v715_v22 }
  0xa3   :  { %v728_v30 = vpop.permute.xlu0 %727  ;;  %v634_v31 = vpack.c.bf16 %v67_v27, %v946_v5  ;;  %v648_v32 = vpack.c.bf16 %v70_v28, %v948_v6  ;;  %v650_v35 = vpack.c.bf16 %v69_v29, %v944_v4  ;;  %v734_v36 = vunpack.i.l.bf16 %v733_v26 }
  0xa4   :  { %v730_v33 = vunpack.i.h.bf16 %v728_v30  ;;  %v729_v34 = vunpack.i.l.bf16 %v728_v30  ;;  %v735_v45 = vunpack.i.h.bf16 %v733_v26 }
  0xa5   :  { %635 = vmatpush1.bf16.msra.mxu0 %v634_v31  ;;  %649 = vmatprep.subr.bf16.mxu1 %v648_v32  ;;  %v95_v46 = vsel %vm94_vm1, %v734_v36, %v724_v25 }
  0xa6   :  { %651 = vmatpush1.bf16.msra.mxu1 %v650_v35  ;;  %v743_v37 = vpop.permute.xlu1 %742  ;;  %v124_v39 = vsel %vm122_vm2, %v729_v34, %v730_v33  ;;  %v97_v55 = vsel %vm94_vm1, %v725_v24, %v735_v45 }
  0xa7   :  { %v745_v40 = vunpack.i.h.bf16 %v743_v37  ;;  %v744_v41 = vunpack.i.l.bf16 %v743_v37  ;;  %v1005_v42 = vpop.permute.xlu0 %737  ;;  %v636_v43 = vpack.c.bf16 %v124_v39, %v96_v38 }
  0xa8   :  { %v739_v44 = vunpack.i.l.bf16 %v1005_v42 }
  0xa9   :  { %637 = vmatprep.subr.bf16.mxu0 %v636_v43  ;;  %v123_v47 = vsel %vm122_vm2, %v744_v41, %v729_v34  ;;  %v125_v51 = vsel %vm122_vm2, %v730_v33, %v745_v40 }
  0xaa   :  { %v748_v48 = vpop.permute.xlu1 %747  ;;  %v638_v49 = vpack.c.bf16 %v123_v47, %v95_v46  ;;  %v98_v52 = vsel %vm94_vm1, %v735_v45, %v739_v44  ;;  %v654_v59 = vpack.c.bf16 %v125_v51, %v97_v55 }
  0xab   :  { %v1010_v50 = vpop.permute.xlu0 %116  ;;  %v750_v56 = vunpack.i.h.bf16 %v748_v48  ;;  %v749_v57 = vunpack.i.l.bf16 %v748_v48 }
  0xac   :  { %v126_v53 = vsel %vm122_vm2, %v745_v40, %v1010_v50  ;;  %639 = vmatpush1.bf16.msra.mxu0 %v638_v49 }
  0xad   :  { %v652_v54 = vpack.c.bf16 %v126_v53, %v98_v52  ;;  %v152_v3 = vsel %vm150_vm3, %v749_v57, %v750_v56  ;;  %v720_v53 = vunpack.i.h.bf16 %v990_v13 }
  0xae   :  { %v758_v58 = vpop.permute.xlu1 %757 }
  0xaf   :  { %v753_v60 = vpop.permute.xlu0 %752  ;;  %653 = vmatprep.subr.bf16.mxu1 %v652_v54  ;;  %v759_v63 = vunpack.i.l.bf16 %v758_v58  ;;  %v760_v11 = vunpack.i.h.bf16 %v758_v58 }
  0xb0   :  { %v755_v61 = vunpack.i.h.bf16 %v753_v60  ;;  %v754_v62 = vunpack.i.l.bf16 %v753_v60  ;;  %655 = vmatpush1.bf16.msra.mxu1 %v654_v59  ;;  %v71_v59 = vsel %vm66_vm0, %v719_v21, %v720_v53 }
  0xb1   :  { %v151_v12 = vsel %vm150_vm3, %v759_v63, %v749_v57  ;;  %v153_v23 = vsel %vm150_vm3, %v750_v56, %v760_v11 }
  0xb2   :  { %v763_v2 = vpop.permute.xlu1 %762  ;;  %v180_v4 = vsel %vm178_vm4, %v754_v62, %v755_v61 }
  0xb3   :  { %v765_v5 = vunpack.i.h.bf16 %v763_v2  ;;  %v764_v6 = vunpack.i.l.bf16 %v763_v2  ;;  %v1021_v7 = vpop.permute.xlu0 %144  ;;  %v640_v8 = vpack.c.bf16 %v180_v4, %v152_v3  ;;  %v666_v3 = vpack.c.bf16 %v71_v59, %v936_v0 }
  0xb4   :  { %v154_v19 = vsel %vm150_vm3, %v760_v11, %v1021_v7  ;;  %v894_v11 = vmov 0.0|0.0  }
  0xb5   :  { %641 = vmatprep.subr.bf16.mxu0 %v640_v8  ;;  %v179_v14 = vsel %vm178_vm4, %v764_v6, %v754_v62  ;;  %v181_v18 = vsel %vm178_vm4, %v755_v61, %v765_v5  ;;  %v1053_v62 = vld [vmem:[#allocation5] sm:$0xff] }
  0xb6   :  { %v768_v15 = vpop.permute.xlu1 %767  ;;  %v642_v16 = vpack.c.bf16 %v179_v14, %v151_v12  ;;  %v658_v27 = vpack.c.bf16 %v181_v18, %v153_v23 }
  0xb7   :  { %v1025_v17 = vpop.permute.xlu0 %172  ;;  %v770_v24 = vunpack.i.h.bf16 %v768_v15  ;;  %v769_v25 = vunpack.i.l.bf16 %v768_v15 }
  0xb8   :  { %v182_v20 = vsel %vm178_vm4, %v765_v5, %v1025_v17  ;;  %643 = vmatpush1.bf16.msra.mxu0 %v642_v16 }
  0xb9   :  { %v656_v22 = vpack.c.bf16 %v182_v20, %v154_v19  ;;  %v211_v33 = vsel %vm209_vm5, %v769_v25, %v770_v24 }
  0xba   :  { %v778_v26 = vpop.permute.xlu1 %777 }
  0xbb   :  { %v773_v28 = vpop.permute.xlu0 %772  ;;  %657 = vmatprep.subr.bf16.mxu1 %v656_v22  ;;  %v779_v31 = vunpack.i.l.bf16 %v778_v26  ;;  %v780_v39 = vunpack.i.h.bf16 %v778_v26 }
  0xbc   :  { %v775_v29 = vunpack.i.h.bf16 %v773_v28  ;;  %v774_v30 = vunpack.i.l.bf16 %v773_v28  ;;  %659 = vmatpush1.bf16.msra.mxu1 %v658_v27 }
  0xbd   :  { %v210_v40 = vsel %vm209_vm5, %v779_v31, %v769_v25  ;;  %v212_v52 = vsel %vm209_vm5, %v770_v24, %v780_v39 }
  0xbe   :  { %v783_v32 = vpop.permute.xlu1 %782  ;;  %v242_v34 = vsel %vm240_vm6, %v774_v30, %v775_v29 }
  0xbf   :  { %v785_v35 = vunpack.i.h.bf16 %v783_v32  ;;  %v784_v36 = vunpack.i.l.bf16 %v783_v32  ;;  %v1035_v37 = vpop.permute.xlu0 %201  ;;  %v644_v38 = vpack.c.bf16 %v242_v34, %v211_v33 }
  0xc0   :  { %v213_v48 = vsel %vm209_vm5, %v780_v39, %v1035_v37 }
  0xc1   :  { %645 = vmatprep.subr.bf16.mxu0 %v644_v38  ;;  %v241_v41 = vsel %vm240_vm6, %v784_v36, %v774_v30  ;;  %v243_v47 = vsel %vm240_vm6, %v775_v29, %v785_v35 }
  0xc2   :  { %v65_v43 = vpop.permute.xlu1 %64  ;;  %v646_v45 = vpack.c.bf16 %v241_v41, %v210_v40  ;;  %v662_v55 = vpack.c.bf16 %v243_v47, %v212_v52 }
  0xc3   :  { %v1039_v46 = vpop.permute.xlu0 %232  ;;  %v72_v58 = vsel %vm66_vm0, %v720_v53, %v65_v43  ;;  %v681_v0 = vpack.c.bf16 %v65_v43, %v970_v9 }
  0xc4   :  { %v244_v49 = vsel %vm240_vm6, %v785_v35, %v1039_v46  ;;  %647 = vmatpush1.bf16.msra.mxu0 %v646_v45  ;;  %v664_v63 = vpack.c.bf16 %v72_v58, %v938_v1  ;;  %v740_v1 = vunpack.i.h.bf16 %v1005_v42 }
  0xc5   :  { %v660_v51 = vpack.c.bf16 %v244_v49, %v213_v48 }
  0xc6   :  { %v260_v54 = vpop.permute.xlu1 %259  ;;  %v99_v15 = vsel %vm94_vm1, %v739_v44, %v740_v1 }
  0xc7   :  { %v258_v56 = vpop.permute.xlu0 %257  ;;  %661 = vmatprep.subr.bf16.mxu1 %v660_v51 }
  0xc8   :  { %663 = vmatpush1.bf16.msra.mxu1 %v662_v55  ;;  %v273_v57 = vsel %vm271_vm7, %v258_v56, %v260_v54 }
  0xc9   :  { %306 = vmatprep.subr.mxu0 %v273_v57 }
  0xca   :  { %v262_v60 = vpop.permute.xlu1 %261 }
  0xcb   :  { %v256_v61 = vpop.permute.xlu0 %255  ;;  %v274_v5 = vsel %vm271_vm7, %v260_v54, %v262_v60 }
  0xcc   :  { %v272_v2 = vsel %vm271_vm7, %v256_v61, %v258_v56 }
  0xcd   :  { %307 = vmatpush1.msra.mxu0 %v272_v2 }
  0xce   :  { %665 = vmatprep.subr.bf16.mxu0 %v664_v63  ;;  %v93_v4 = vpop.permute.xlu1 %92  ;;  %597 = vmatmul.mubr.msk.f32.vlgmr.msra.gmra.mrb[0].mxu0 %vm286_vm8, %v1053_v62 }
  0xcf   :  { %v1060_v13 = vpop.permute.xlu0 %263  ;;  %667 = vmatpush1.bf16.msra.mxu0 %v666_v3  ;;  %496 = vmatprep.mubr.f32.mxu0 %v892_v10  ;;  %v100_v18 = vsel %vm94_vm1, %v740_v1, %v93_v4 }
  0xd0   :  { %v275_v21 = vsel %vm271_vm7, %v262_v60, %v1060_v13 }
  0xd1   :  { %377 = vmatprep.subr.mxu1 %v275_v21 }
  0xd2   :  { %378 = vmatpush1.msra.mxu1 %v274_v5  ;;  %v793_v6 = vpop.permute.xlu1 %792 }
  0xd3   :  { %v788_v8 = vpop.permute.xlu0 %787  ;;  %680 = vmatprep.subr.bf16.mxu1 %v894_v11  ;;  %598 = vmatmul.mubr.msk.f32.vlgmr.msra.gmra.mrb[0].mxu1 %vm286_vm8, %v1053_v62  ;;  %v795_v16 = vunpack.i.h.bf16 %v793_v6  ;;  %v794_v9 = vunpack.i.l.bf16 %v793_v6 }
  0xd4   :  { %v790_v12 = vunpack.i.h.bf16 %v788_v8  ;;  %v789_v14 = vunpack.i.l.bf16 %v788_v8  ;;  %682 = vmatpush3.bf16.msra.mxu1 %v681_v0  ;;  %629 = vmatprep.mubr.msk.f32.mxu1 %vm895_vm9, %v892_v10 }
  0xd5   :  { %683 = vmatprep.subr.bf16.mxu1 %v894_v11  ;;  %v155_v42 = vsel %vm150_vm3, %v1021_v7, %v794_v9  ;;  %v156_v29 = vsel %vm150_vm3, %v794_v9, %v795_v16 }
  0xd6   :  { %v684_v19 = vpack.c.bf16 %v790_v12, %v93_v4  ;;  %v127_v20 = vsel %vm122_vm2, %v1010_v50, %v789_v14  ;;  %v803_v22 = vpop.permute.xlu1 %802  ;;  %v128_v23 = vsel %vm122_vm2, %v789_v14, %v790_v12 }
  0xd7   :  { %v670_v24 = vpack.c.bf16 %v127_v20, %v99_v15  ;;  %v798_v25 = vpop.permute.xlu0 %797  ;;  %v668_v26 = vpack.c.bf16 %v128_v23, %v100_v18  ;;  %v805_v44 = vunpack.i.h.bf16 %v803_v22  ;;  %v804_v30 = vunpack.i.l.bf16 %v803_v22 }
  0xd8   :  { %v800_v27 = vunpack.i.h.bf16 %v798_v25  ;;  %v799_v28 = vunpack.i.l.bf16 %v798_v25  ;;  %685 = vmatpush3.bf16.msra.mxu1 %v684_v19 }
  0xd9   :  { %669 = vmatprep.subr.bf16.mxu0 %v668_v26  ;;  %686 = vmatprep.subr.bf16.mxu1 %v894_v11  ;;  %v214_v7 = vsel %vm209_vm5, %v1035_v37, %v804_v30  ;;  %v215_v41 = vsel %vm209_vm5, %v804_v30, %v805_v44 }
  0xda   :  { %v687_v31 = vpack.c.bf16 %v800_v27, %v795_v16  ;;  %v183_v50 = vsel %vm178_vm4, %v1025_v17, %v799_v28  ;;  %671 = vmatpush1.bf16.msra.mxu0 %v670_v24  ;;  %v208_v32 = vpop.permute.xlu1 %207  ;;  %v184_v33 = vsel %vm178_vm4, %v799_v28, %v800_v27 }
  0xdb   :  { %v674_v34 = vpack.c.bf16 %v183_v50, %v155_v42  ;;  %v808_v35 = vpop.permute.xlu0 %807  ;;  %v672_v36 = vpack.c.bf16 %v184_v33, %v156_v29  ;;  %v216_v49 = vsel %vm209_vm5, %v805_v44, %v208_v32 }
  0xdc   :  { %v810_v38 = vunpack.i.h.bf16 %v808_v35  ;;  %v809_v39 = vunpack.i.l.bf16 %v808_v35  ;;  %688 = vmatpush3.bf16.msra.mxu1 %v687_v31 }
  0xdd   :  { %673 = vmatprep.subr.bf16.mxu0 %v672_v36  ;;  %689 = vmatprep.subr.bf16.mxu1 %v894_v11 }
  0xde   :  { %v245_v40 = vsel %vm240_vm6, %v1039_v46, %v809_v39  ;;  %675 = vmatpush1.bf16.msra.mxu0 %v674_v34  ;;  %v266_v17 = vpop.permute.xlu1 %265  ;;  %v246_v43 = vsel %vm240_vm6, %v809_v39, %v810_v38 }
  0xdf   :  { %v678_v45 = vpack.c.bf16 %v245_v40, %v214_v7  ;;  %v239_v47 = vpop.permute.xlu0 %238  ;;  %v676_v48 = vpack.c.bf16 %v246_v43, %v215_v41  ;;  %v276_v54 = vsel %vm271_vm7, %v1060_v13, %v266_v17 }
  0xe0   :  { %v247_v51 = vsel %vm240_vm6, %v810_v38, %v239_v47 }
  0xe1   :  { %v690_v52 = vpack.c.bf16 %v247_v51, %v216_v49  ;;  %677 = vmatprep.subr.bf16.mxu0 %v676_v48 }
  0xe2   :  { %679 = vmatpush1.bf16.msra.mxu0 %v678_v45  ;;  %v270_v37 = vpop.permute.xlu1 %269 }
  0xe3   :  { %v268_v53 = vpop.permute.xlu0 %267  ;;  %691 = vmatpush3.bf16.msra.mxu1 %v690_v52 }
  0xe4   :  { %v277_v46 = vsel %vm271_vm7, %v266_v17, %v268_v53  ;;  %627 = vmatprep.subr.mxu1 %v892_v10  ;;  %v278_v55 = vsel %vm271_vm7, %v268_v53, %v270_v37 }
  0xe5   :  { %448 = vmatprep.subr.mxu0 %v277_v46 }
  0xe6   :  { %449 = vmatpush1.msra.mxu0 %v276_v54 }
  0xe7   :  { %599 = vmatmul.mubr.msk.f32.vlgmr.msra.gmra.mrb[2].mxu0 %vm286_vm8, %v1053_v62  ;;  %628 = vmatpush3.msra.mxu1 %v278_v55 }
  0xe8   :  { %630 = vmatmul.mubr.msk.f32.vlgmr.msra.gmra.mrb[2].mxu1 %vm286_vm8, %v1053_v62 }
 0x1a1   :  { %v356_v56 = vpop.f32.mrb[0].mxu0 }
 0x1a2   :  { %573 = vst [vmem:[#allocation7] sm:$0xff] %v356_v56  ;;  %v358_v57 = vpop.f32.mrb[1].mxu0 }
 0x1a3   :  { %574 = vst [vmem:[#allocation7 + $0x8] sm:$0xff] %v358_v57 }
 0x1a6   :  { %v427_v58 = vpop.f32.mrb[0].mxu1 }
 0x1a7   :  { %575 = vst [vmem:[#allocation7 + $0x10] sm:$0xff] %v427_v58  ;;  %v429_v10 = vpop.f32.mrb[1].mxu1 }
 0x1a8   :  { %576 = vst [vmem:[#allocation7 + $0x18] sm:$0xff] %v429_v10 }
 0x1ba   :  { %v498_v59 = vpop.f32.mrb[2].mxu0 }
 0x1bb   :  { %577 = vst [vmem:[#allocation7 + $0x20] sm:$0xff] %v498_v59  ;;  %v500_v60 = vpop.f32.mrb[3].mxu0  ;;  %v569_v61 = vpop.f32.mrb[2].mxu1 }
 0x1bc   :  { %578 = vst [vmem:[#allocation7 + $0x28] sm:$0xff] %v500_v60  ;;  %580 = vst.msk [vmem:[#allocation7 + $0x30] sm:$0xff] %vm579_vm10, %v569_v61  ;;  %v631_v63 = vpop.f32.mrb[3].mxu1 }
 0x1bd   :  { %866 = shalt.err (!%p863_p6)
}
 0x1be   :  { %s867_s16 = scalar_lea.hbm %s1115_s2, 896 }
 0x1bf   :  { %p868_p7 = scmp.ne.s32.totalorder %s1115_s2, %s867_s16  ;;  %p871_p8 = scmp.lt.u32.totalorder %s867_s16, %s1115_s2 }
 0x1c1   :  { %p873_p9 = pnand %p871_p8, %p868_p7 }
 0x1c3   :  { %876 = shalt.err (!%p873_p9)
}
 0x1c4   :  { %590 = dma.vmem_to_hbm [thread:$0]  %s588_s12, 896, %s1115_s2, [#allocation4]  }
 0x1c5   :  { %881 = dma.done.wait [#allocation4], 896  }
 0x1c6   :  { %882 = vsyncadd [#allocation4], 4294966400 }
 0x1c7   :  { %594 = vsyncpa [#allocation3], 1 }
 0x1c8   :  { %595 = vsyncpa [#allocation6], 1 }
 0x1c9   :  { %596 = vsyncpa [#allocation4], 1 }

</bundles_post_ra>
